<compile_context>
chip_gen: v7x
topology: tpu7x:2x2x1
jax: 0.10.0
libtpu: 0.0.40
codegen_flags: <defaults>
</compile_context>

<pallas_src>
import jax
import jax.numpy as jnp
from jax.experimental import pallas as pl
from jax.experimental.pallas import tpu as pltpu


def disentangler2_kernel(x_ref, wt_ref, shift_ref, o_ref):
    # Linear (+ folded BN scale): [TILE_N, 2E] @ [2E, TILE_E] -> f32 accumulate
    y = jnp.dot(x_ref[...], wt_ref[...], preferred_element_type=jnp.float32)
    # Folded bias + BN shift, then ReLU (f32 epilogue on all generations).
    y = y + shift_ref[...]
    o_ref[...] = jnp.maximum(y, 0.0).astype(o_ref.dtype)


def disentangler2_forward(x, w, b, gamma, beta, running_mean, running_var,
                          eps=1e-5, compute_dtype=jnp.float32, max_tile_n=512):
    """x: [N, 2E] f32; w: [E, 2E]; b/gamma/beta/mean/var: [E].

    compute_dtype: dtype of the MXU operands (jnp.bfloat16 recommended on
    v6e/v7x for this memory-bound layer; accumulation stays f32).
    NOTE: at tiny shapes (like the demo below) plain XLA fusion is faster than
    any Pallas launch; dispatch to this kernel only for large batches.
    """
    n, in_dim = x.shape
    emb_dim = w.shape[0]
    assert in_dim == 2 * emb_dim

    # ---- Fold BN (eval, running stats) + Linear bias into weight & shift ----
    #   y = (x @ w.T + b) * scale + (beta - mean*scale)
    #     = x @ (w.T * scale) + (b*scale + beta - mean*scale)
    # In production do this once at parameter-load time, not per call.
    scale = gamma / jnp.sqrt(running_var + eps)                      # [E]
    wt = (w.T * scale[None, :]).astype(compute_dtype)                # [2E, E]
    shift = (b * scale + beta - running_mean * scale)                # [E]
    shift = shift.astype(jnp.float32).reshape(1, emb_dim)

    x_c = x.astype(compute_dtype)

    # ---- Batch (row) tiling: largest multiple of the sublane count <= cap ---
    sublane = 16 if compute_dtype == jnp.bfloat16 else 8
    tile_n = max(sublane,
                 min(max_tile_n, pl.cdiv(n, sublane) * sublane))
    n_pad = pl.cdiv(n, tile_n) * tile_n
    if n_pad != n:
        x_c = jnp.pad(x_c, ((0, n_pad - n), (0, 0)))
    grid_n = n_pad // tile_n

    # ---- Feature tiling: keep weight fully resident unless E is large -------
    if emb_dim >= 1024 and emb_dim % 512 == 0:
        tile_e = 512
    else:
        tile_e = emb_dim
    grid_e = emb_dim // tile_e

    # ---- Explicit VMEM budget: double-buffered x/out tiles + resident weight -
    isz = jnp.dtype(compute_dtype).itemsize
    vmem_need = (2 * tile_n * in_dim * isz        # x tile, double-buffered
                 + 2 * tile_n * tile_e * 4        # out tile (f32), double-buffered
                 + 2 * in_dim * tile_e * isz      # weight tile
                 + 2 * tile_e * 4)                # shift
    vmem_limit = int(min(100 * 2**20, max(16 * 2**20, 2 * vmem_need)))

    out = pl.pallas_call(
        disentangler2_kernel,
        out_shape=jax.ShapeDtypeStruct((n_pad, emb_dim), jnp.float32),
        grid=(grid_n, grid_e),
        in_specs=[
            pl.BlockSpec((tile_n, in_dim), lambda i, j: (i, 0)),
            pl.BlockSpec((in_dim, tile_e), lambda i, j: (0, j)),
            pl.BlockSpec((1, tile_e), lambda i, j: (0, j)),
        ],
        out_specs=pl.BlockSpec((tile_n, tile_e), lambda i, j: (i, j)),
        compiler_params=pltpu.CompilerParams(
            dimension_semantics=("parallel", "parallel"),
            vmem_limit_bytes=vmem_limit),
    )(x_c, wt, shift)

    return out[:n] if n_pad != n else out


def reference_forward(x, w, b, gamma, beta, running_mean, running_var,
                      eps=1e-5):
    y = x @ w.T + b
    y = gamma * (y - running_mean) / jnp.sqrt(running_var + eps) + beta
    return jnp.maximum(y, 0.0)


if __name__ == "__main__":
    emb_dim = 32
    batch = 8

    key = jax.random.PRNGKey(0)
    k_x, k_w, k_b, k_g, k_be, k_m, k_v = jax.random.split(key, 7)

    x = jax.random.normal(k_x, (batch, 2 * emb_dim), dtype=jnp.float32)

    # Deterministic parameter init (shapes per nn.Linear(2E, E) + BatchNorm1d(E)).
    bound = 1.0 / jnp.sqrt(2.0 * emb_dim)
    w = jax.random.uniform(k_w, (emb_dim, 2 * emb_dim),
                           minval=-bound, maxval=bound, dtype=jnp.float32)
    b = jax.random.uniform(k_b, (emb_dim,),
                           minval=-bound, maxval=bound, dtype=jnp.float32)
    gamma = 1.0 + 0.1 * jax.random.normal(k_g, (emb_dim,), dtype=jnp.float32)
    beta = 0.1 * jax.random.normal(k_be, (emb_dim,), dtype=jnp.float32)
    running_mean = 0.1 * jax.random.normal(k_m, (emb_dim,), dtype=jnp.float32)
    running_var = jnp.abs(1.0 + 0.1 * jax.random.normal(
        k_v, (emb_dim,), dtype=jnp.float32))

    out = disentangler2_forward(x, w, b, gamma, beta, running_mean,
                                running_var)
    out = jax.block_until_ready(out)

    ref = reference_forward(x, w, b, gamma, beta, running_mean, running_var)
    assert out.shape == (batch, emb_dim)
    assert jnp.allclose(out, ref, atol=1e-5, rtol=1e-5), "mismatch vs reference"

    print("KERNEL_OK")
</pallas_src>

<mosaic_0001>
module attributes {stable_mosaic.version = 11 : i64} {
  func.func @disentangler2_kernel(%arg0: i32, %arg1: i32, %arg2: memref<8x64xf32, #tpu.memory_space<vmem>>, %arg3: memref<64x32xf32, #tpu.memory_space<vmem>>, %arg4: memref<1x32xf32, #tpu.memory_space<vmem>>, %arg5: memref<8x32xf32, #tpu.memory_space<vmem>>) attributes {dimension_semantics = [#tpu.dimension_semantics<parallel>, #tpu.dimension_semantics<parallel>], iteration_bounds = array<i64: 1, 1>, scalar_prefetch = 0 : i64, scratch_operands = 0 : i64, tpu.core_type = #tpu.core_type<tc>, window_params = [{transform_indices = @transform_0, window_bounds = array<i64: 8, 64>}, {transform_indices = @transform_1, window_bounds = array<i64: 64, 32>}, {transform_indices = @transform_2, window_bounds = array<i64: 1, 32>}, {transform_indices = @transform_3, window_bounds = array<i64: 8, 32>}]} {
    %c0 = arith.constant 0 : index
    %c0_0 = arith.constant 0 : index
    %0 = vector.load %arg2[%c0, %c0_0] : memref<8x64xf32, #tpu.memory_space<vmem>>, vector<8x64xf32>
    %c0_1 = arith.constant 0 : index
    %c0_2 = arith.constant 0 : index
    %1 = vector.load %arg3[%c0_1, %c0_2] : memref<64x32xf32, #tpu.memory_space<vmem>>, vector<64x32xf32>
    %cst = arith.constant dense<0.000000e+00> : vector<8x32xf32>
    %2 = tpu.matmul %0, %1, %cst {dimension_numbers = #tpu.dot_dimension_numbers<[1], [0], [0], [1], [0, 0, 1, 1], [], []>} : vector<8x64xf32>, vector<64x32xf32>, vector<8x32xf32> -> vector<8x32xf32>
    %c0_3 = arith.constant 0 : index
    %c0_4 = arith.constant 0 : index
    %3 = vector.load %arg4[%c0_3, %c0_4] : memref<1x32xf32, #tpu.memory_space<vmem>>, vector<1x32xf32>
    %4 = vector.broadcast %3 : vector<1x32xf32> to vector<8x32xf32>
    %5 = arith.addf %2, %4 : vector<8x32xf32>
    %cst_5 = arith.constant 0.000000e+00 : f32
    %6 = vector.broadcast %cst_5 : f32 to vector<8x32xf32>
    %7 = arith.maximumf %5, %6 : vector<8x32xf32>
    %c0_6 = arith.constant 0 : index
    %c0_7 = arith.constant 0 : index
    %8 = vector.load %arg5[%c0_6, %c0_7] : memref<8x32xf32, #tpu.memory_space<vmem>>, vector<8x32xf32>
    tpu.vector_store %arg5[%c0_6, %c0_7], %7 {strides = array<i32>} : memref<8x32xf32, #tpu.memory_space<vmem>>, vector<8x32xf32>,
    return
  }
  func.func @transform_0(%arg0: i32, %arg1: i32) -> (i32, i32) {
    %c0_i32 = arith.constant 0 : i32
    %c0_i32_0 = arith.constant 0 : i32
    return %arg0, %c0_i32 : i32, i32
  }
  func.func @transform_1(%arg0: i32, %arg1: i32) -> (i32, i32) {
    %c0_i32 = arith.constant 0 : i32
    %c0_i32_0 = arith.constant 0 : i32
    return %c0_i32, %arg1 : i32, i32
  }
  func.func @transform_2(%arg0: i32, %arg1: i32) -> (i32, i32) {
    %c0_i32 = arith.constant 0 : i32
    %c0_i32_0 = arith.constant 0 : i32
    return %c0_i32, %arg1 : i32, i32
  }
  func.func @transform_3(%arg0: i32, %arg1: i32) -> (i32, i32) {
    %c0_i32 = arith.constant 0 : i32
    return %arg0, %arg1 : i32, i32
  }
}

</mosaic_0001>

<bundles_post_ra>
// kernel: tpu_custom_call.1
= control target key start
LH: loop header
LB: loop body
LE: loop exit
PB: predicated region body
PF: predicated region fallthrough
CT: control target
= control target key end

     0   :  { %v192_v3 = vmov 0.0|0.0   ;;  %vm193_vm0 = vmmov 0   ;;  %v194_v6 = vmov 0.0   ;;  %s258_s0 = inlined_call_operand.vmem [shape: f32[8,64], index: 0, kind: input, shape index: {}]   ;;  %s259_s1 = inlined_call_operand.vmem [shape: f32[64,32], index: 1, kind: input, shape index: {}]   ;;  %s260_s2 = inlined_call_operand.vmem [shape: f32[1,32], index: 2, kind: input, shape index: {}]   ;;  %s261_s3 = inlined_call_operand.hbm [shape: f32[8,32], index: 3, kind: output, shape index: {}]  }
   0x1   :  { %v16_v0 = vld [vmem:[%s259_s1] sm:$0xff]  ;;  %v17_v1 = vld [vmem:[%s259_s1 + $0x8] sm:$0xff]  ;;  %v18_v2 = vld [vmem:[%s259_s1 + $0x10] sm:$0xff]  ;;  %152 = vmatprep.subr.bf16.mxu0 %v192_v3  ;;  %149 = vmatprep.mubr.msk.f32.mxu0 %vm193_vm0, %v194_v6 }
   0x2   :  { %v153_v4 = vpack.c.bf16 %v17_v1, %v16_v0  ;;  %v19_v5 = vld [vmem:[%s259_s1 + $0x18] sm:$0xff] }
   0x3   :  { %v156_v7 = vpack.c.bf16 %v19_v5, %v18_v2 }
   0x4   :  { %154 = vmatpush3.bf16.msra.mxu0 %v153_v4 }
   0x5   :  { %8 = vsyncpa [#allocation3], 0  ;;  %155 = vmatprep.subr.bf16.mxu0 %v192_v3  ;;  %v20_v8 = vld [vmem:[%s259_s1 + $0x20] sm:$0xff]  ;;  %v21_v9 = vld [vmem:[%s259_s1 + $0x28] sm:$0xff]  ;;  %vm31_vm1 = vcmask 523264   ;;  %s195_s5 = smov [#allocation2]  }
   0x6   :  { %v159_v10 = vpack.c.bf16 %v21_v9, %v20_v8  ;;  %v22_v11 = vld [vmem:[%s259_s1 + $0x30] sm:$0xff]  ;;  %v23_v12 = vld [vmem:[%s259_s1 + $0x38] sm:$0xff]  ;;  %v15_v14 = vld [vmem:[%s258_s0] sm:$0xff]  ;;  %s114_s6 = sshll.u32 %s195_s5, 4  ;;  %vm106_vm2 = vcmask 261120   ;;  %s115_s6 = int_to_ptr.vmem [resolvable:$true] %s114_s6 }
   0x7   :  { %v162_v13 = vpack.c.bf16 %v23_v12, %v22_v11  ;;  %v122_v15 = vld [vmem:[%s260_s2] ss:$0 sm:$0xff]  ;;  %s168_s1 = scalar_lea.vmem %s115_s6, 128  ;;  %p173_p1 = scmp.lt.s32.totalorder %s115_s6, %s115_s6 }
   0x8   :  { %157 = vmatpush3.bf16.msra.mxu0 %v156_v7  ;;  %p169_p0 = scmp.ne.s32.totalorder %s115_s6, %s168_s1  ;;  %p174_p2 = scmp.lt.s32.totalorder %s168_s1, %s168_s1 }
   0x9   :  { %158 = vmatprep.subr.bf16.mxu0 %v192_v3 }
   0xa   :  { %p175_p3 = por %p174_p2, %p173_p1 }
   0xc   :  { %160 = vmatpush3.bf16.msra.mxu0 %v159_v10  ;;  %p176_p4 = pnand %p175_p3, %p169_p0 }
   0xd   :  { %161 = vmatprep.subr.bf16.mxu0 %v192_v3 }
  0x10   :  { %163 = vmatpush3.bf16.msra.mxu0 %v162_v13 }
  0x13   :  { %150 = vmatmul.mubr.msk.f32.vlgmr.msra.gmra.mrb[0].mxu0 %vm31_vm1, %v15_v14 }
  0xe6   :  { %v101_v16 = vpop.f32.mrb[0].mxu0 }
  0xe7   :  { %v102_v17 = vadd.f32 %v122_v15, %v101_v16  ;;  %v151_v18 = vpop.f32.mrb[1].mxu0 }
  0xe9   :  { %v105_v19 = vmax.f32 %v102_v17, 0.0 }
  0xeb   :  { %107 = vst.msk [vmem:[#allocation2] sm:$0xff] %vm106_vm2, %v105_v19 }
  0xec   :  { %179 = shalt.err (!%p176_p4)
}
  0xed   :  { %s180_s2 = scalar_lea.hbm %s261_s3, 128 }
  0xee   :  { %p181_p5 = scmp.ne.s32.totalorder %s261_s3, %s180_s2  ;;  %p184_p6 = scmp.lt.u32.totalorder %s180_s2, %s261_s3 }
  0xf0   :  { %p186_p7 = pnand %p184_p6, %p181_p5 }
  0xf2   :  { %189 = shalt.err (!%p186_p7)
}
  0xf3   :  { %117 = dma.vmem_to_hbm [thread:$0]  %s115_s6, 128, %s261_s3, [#allocation3]  }
  0xf4   :  { %190 = dma.done.wait [#allocation3], 128  }
  0xf5   :  { %191 = vsyncadd [#allocation3], 4294967168 }
  0xf6   :  { %121 = vsyncpa [#allocation3], 1 }

</bundles_post_ra>
